<compile_context>
chip_gen: v6e
topology: v6e:2x2x1
jax: 0.10.0
libtpu: 0.0.40
codegen_flags: <defaults>
</compile_context>

<pallas_src>
import functools

import jax
import jax.numpy as jnp
from jax import lax
from jax.experimental import pallas as pl
from jax.experimental.pallas import tpu as pltpu


def _lora_kernel(x_ref, a_ref, b_ref, o_ref, state_ref, *, alpha):
    # state = (x @ A^T) * alpha, computed once per row tile (at j == 0) and kept in VMEM.
    @pl.when(pl.program_id(1) == 0)
    def _():
        st = lax.dot_general(
            x_ref[...], a_ref[...], (((1,), (1,)), ((), ())),
            preferred_element_type=jnp.float32,
        )                                           # (tm, rank) f32
        state_ref[...] = (st * alpha).astype(state_ref.dtype)

    # out tile = state @ B   (B pre-transposed to (rank, out_dim): standard contraction,
    # no in-kernel transpose, rank on the sublane axis of B).
    out = lax.dot_general(
        state_ref[...], b_ref[...], (((1,), (0,)), ((), ())),
        preferred_element_type=jnp.float32,
    )                                               # (tm, tn) f32
    o_ref[...] = out.astype(o_ref.dtype)


def _round_up(v, mult):
    return ((v + mult - 1) // mult) * mult


def _vmem_budget_bytes():
    """Generation-aware (tile_budget, vmem_limit). v5e/v6e: 128 MiB VMEM/TC; v7x: 64 MiB."""
    try:
        cap = int(pltpu.get_tpu_info().vmem_capacity_bytes)
    except Exception:
        cap = 64 * 1024 * 1024
    if cap >= 128 * 1024 * 1024:
        return 64 * 1024 * 1024, 96 * 1024 * 1024
    return 26 * 1024 * 1024, 48 * 1024 * 1024


def _choose_tile_m(m, input_dim, tn, rank, itemsize, budget_bytes, weights_bytes):
    """Pick a row-tile size sized against the real VMEM consumers:
       double-buffered x and out tiles, the f32 (tm, tn) matmul result temp, the f32
       (tm, rank) state + scratch, minus the resident (assumed double-buffered) weights."""
    avail = max(budget_bytes - weights_bytes, 2 * 1024 * 1024)
    per_row = (
        2 * input_dim * itemsize   # x tile, double-buffered
        + 2 * tn * itemsize        # out tile, double-buffered
        + tn * 4                   # f32 matmul result temp before cast
        + 2 * rank * 4             # f32 state temp + VMEM state scratch
    )
    tm = avail // per_row
    tm = max(8, min(1024, (tm // 8) * 8))            # multiple of 8 (sublane)
    m8 = _round_up(m, 8)
    if tm >= m8:
        if m8 > 8:
            # Fits in one tile: split into >=2 row tiles so megacore sharding and
            # DMA/compute pipelining actually engage.
            tm = max(8, min(tm, _round_up(-(-m8 // 2), 8)))
        else:
            tm = m8
    return tm


def lora_forward(x, a_weight, b_weight, alpha: float):
    """x: (..., input_dim); a_weight: (rank, input_dim); b_weight: (output_dim, rank)."""
    orig_shape = x.shape
    input_dim = orig_shape[-1]
    rank = a_weight.shape[0]
    output_dim = b_weight.shape[0]

    # Keep all kernel operands in one dtype (mirrors the PyTorch module dtype behavior).
    a_w = a_weight.astype(x.dtype)                   # (rank, input_dim)
    b_w = b_weight.astype(x.dtype).T                 # (rank, output_dim): lane axis = out
    compute_dtype = jnp.bfloat16 if x.dtype == jnp.bfloat16 else jnp.float32

    x2d = x.reshape(-1, input_dim)
    m = x2d.shape[0]
    itemsize = jnp.dtype(x.dtype).itemsize

    # Pad output columns to a multiple of 128 only if needed (lane-dense stores); extra
    # B columns are zero and sliced off afterwards.
    out_pad = (-output_dim) % 128
    out_dim_p = output_dim + out_pad
    if out_pad:
        b_w = jnp.pad(b_w, ((0, 0), (0, out_pad)))

    # Column tiling bounds the f32 result temp / out tile for very wide LoRA.
    tn = min(out_dim_p, 2048)
    grid_n = pl.cdiv(out_dim_p, tn)

    budget_bytes, vmem_limit = _vmem_budget_bytes()
    weights_bytes = 2 * rank * (input_dim + out_dim_p) * itemsize   # assume double-buffered
    tm = _choose_tile_m(m, input_dim, tn, rank, itemsize, budget_bytes, weights_bytes)
    grid_m = pl.cdiv(m, tm)      # no host-side row padding; ragged last tile is masked

    kernel = functools.partial(_lora_kernel, alpha=alpha)

    flops = 2 * m * rank * (input_dim + out_dim_p)
    bytes_accessed = (m * (input_dim + out_dim_p) + rank * (input_dim + out_dim_p)) * itemsize

    out2d = pl.pallas_call(
        kernel,
        out_shape=jax.ShapeDtypeStruct((m, out_dim_p), x.dtype),
        grid_spec=pltpu.PrefetchScalarGridSpec(
            num_scalar_prefetch=0,
            grid=(grid_m, grid_n),
            in_specs=[
                # x: one row tile per i; constant in j -> stays resident across column tiles.
                pl.BlockSpec((tm, input_dim), lambda i, j: (i, 0)),
                # A: full block, constant index map -> resident across all iterations.
                pl.BlockSpec((rank, input_dim), lambda i, j: (0, 0)),
                # B (pre-transposed): one column tile per j, resident across row tiles.
                pl.BlockSpec((rank, tn), lambda i, j: (0, j)),
            ],
            out_specs=pl.BlockSpec((tm, tn), lambda i, j: (i, j)),
            scratch_shapes=[pltpu.VMEM((tm, rank), compute_dtype)],
        ),
        compiler_params=pltpu.CompilerParams(
            dimension_semantics=("parallel", "arbitrary"),   # megacore shards row tiles
            vmem_limit_bytes=vmem_limit,
        ),
        cost_estimate=pl.CostEstimate(
            flops=flops, transcendentals=0, bytes_accessed=bytes_accessed
        ),
    )(x2d, a_w, b_w)

    if out_pad:
        out2d = out2d[:, :output_dim]
    return out2d.reshape(*orig_shape[:-1], output_dim)


def init_lora_params(key, input_dim: int, output_dim: int, rank: int):
    """Matches the PyTorch __init__:
       - output_transformation.weight (output_dim, rank) zero-initialized
       - input_transformation.weight (rank, input_dim) kaiming_uniform(a=sqrt(5))
         -> uniform(-bound, bound) with bound = sqrt(6 / ((1 + a^2) * fan_in)) = 1/sqrt(fan_in)
    """
    bound = 1.0 / (input_dim ** 0.5)
    a_weight = jax.random.uniform(
        key, (rank, input_dim), dtype=jnp.float32, minval=-bound, maxval=bound
    )
    b_weight = jnp.zeros((output_dim, rank), dtype=jnp.float32)
    return a_weight, b_weight


if __name__ == "__main__":
    batch, seq, input_dim = 2, 8, 32
    output_dim, rank, alpha = 32, 16, 1.5

    key = jax.random.PRNGKey(0)
    kx, kw = jax.random.split(key)

    x = jax.random.normal(kx, (batch, seq, input_dim), dtype=jnp.float32)
    a_weight, b_weight = init_lora_params(kw, input_dim, output_dim, rank)

    out = jax.block_until_ready(lora_forward(x, a_weight, b_weight, alpha))

    # Reference check (B is zero-init, so the true LoRA output is zeros).
    ref = (x @ a_weight.T) @ b_weight.T * alpha
    assert out.shape == (batch, seq, output_dim)
    assert jnp.allclose(out, ref, atol=1e-5), "zero-B LoRA mismatch"

    # Non-zero B: exercises both matmuls, alpha-on-intermediate, and column padding.
    b_nz = jax.random.normal(jax.random.PRNGKey(1), (output_dim, rank), jnp.float32) * 0.02
    out_nz = jax.block_until_ready(lora_forward(x, a_weight, b_nz, alpha))
    ref_nz = (x @ a_weight.T) @ b_nz.T * alpha
    assert jnp.allclose(out_nz, ref_nz, atol=1e-4, rtol=1e-4), "non-zero-B LoRA mismatch"

    # Non-tile-multiple row count: exercises the unpadded ragged last row tile.
    x_big = jax.random.normal(jax.random.PRNGKey(2), (3, 37, input_dim), jnp.float32)
    out_big = jax.block_until_ready(lora_forward(x_big, a_weight, b_nz, alpha))
    ref_big = (x_big @ a_weight.T) @ b_nz.T * alpha
    assert jnp.allclose(out_big, ref_big, atol=1e-4, rtol=1e-4), "ragged-rows LoRA mismatch"

    # bf16 path: intermediate is rounded to bf16 before the second matmul -> loose tolerance.
    xb = x.astype(jnp.bfloat16)
    ab = a_weight.astype(jnp.bfloat16)
    bb = b_nz.astype(jnp.bfloat16)
    out_bf = jax.block_until_ready(lora_forward(xb, ab, bb, alpha))
    ref_bf = ((xb.astype(jnp.float32) @ ab.astype(jnp.float32).T) * alpha) @ bb.astype(jnp.float32).T
    assert out_bf.dtype == jnp.bfloat16
    assert jnp.allclose(out_bf.astype(jnp.float32), ref_bf, atol=5e-2, rtol=5e-2), "bf16 LoRA mismatch"

    print("KERNEL_OK")
</pallas_src>

<mosaic_0001>
module attributes {stable_mosaic.version = 11 : i64} {
  func.func @_lora_kernel(%arg0: i32, %arg1: i32, %arg2: memref<8x32xf32, #tpu.memory_space<vmem>>, %arg3: memref<16x32xf32, #tpu.memory_space<vmem>>, %arg4: memref<16x128xf32, #tpu.memory_space<vmem>>, %arg5: memref<8x128xf32, #tpu.memory_space<vmem>>, %arg6: memref<8x16xf32, #tpu.memory_space<vmem>>) attributes {dimension_semantics = [#tpu.dimension_semantics<parallel>, #tpu.dimension_semantics<arbitrary>], iteration_bounds = array<i64: 2, 1>, scalar_prefetch = 0 : i64, scratch_operands = 1 : i64, tpu.core_type = #tpu.core_type<tc>, window_params = [{transform_indices = @transform_0, window_bounds = array<i64: 8, 32>}, {pipeline_mode = #tpu.pipeline_mode<synchronous>, transform_indices = @transform_1, window_bounds = array<i64: 16, 32>}, {transform_indices = @transform_2, window_bounds = array<i64: 16, 128>}, {transform_indices = @transform_3, window_bounds = array<i64: 8, 128>}]} {
    %c0_i32 = arith.constant 0 : i32
    %0 = arith.cmpi eq, %arg1, %c0_i32 : i32
    %1 = arith.extui %0 : i1 to i32
    %c0_i32_0 = arith.constant 0 : i32
    %2 = arith.cmpi ne, %1, %c0_i32_0 : i32
    scf.if %2 {
      %c0_6 = arith.constant 0 : index
      %c0_7 = arith.constant 0 : index
      %7 = vector.load %arg2[%c0_6, %c0_7] : memref<8x32xf32, #tpu.memory_space<vmem>>, vector<8x32xf32>
      %c0_8 = arith.constant 0 : index
      %c0_9 = arith.constant 0 : index
      %8 = vector.load %arg3[%c0_8, %c0_9] : memref<16x32xf32, #tpu.memory_space<vmem>>, vector<16x32xf32>
      %cst_10 = arith.constant dense<0.000000e+00> : vector<8x16xf32>
      %9 = tpu.matmul %7, %8, %cst_10 {dimension_numbers = #tpu.dot_dimension_numbers<[1], [1], [0], [0], [0, 0, 1, 0], [], []>} : vector<8x32xf32>, vector<16x32xf32>, vector<8x16xf32> -> vector<8x16xf32>
      %cst_11 = arith.constant 1.500000e+00 : f32
      %10 = vector.broadcast %cst_11 : f32 to vector<8x16xf32>
      %11 = arith.mulf %9, %10 : vector<8x16xf32>
      %c0_12 = arith.constant 0 : index
      %c0_13 = arith.constant 0 : index
      %12 = vector.load %arg6[%c0_12, %c0_13] : memref<8x16xf32, #tpu.memory_space<vmem>>, vector<8x16xf32>
      tpu.vector_store %arg6[%c0_12, %c0_13], %11 {strides = array<i32>} : memref<8x16xf32, #tpu.memory_space<vmem>>, vector<8x16xf32>,
    } else {
    }
    %c0 = arith.constant 0 : index
    %c0_1 = arith.constant 0 : index
    %3 = vector.load %arg6[%c0, %c0_1] : memref<8x16xf32, #tpu.memory_space<vmem>>, vector<8x16xf32>
    %c0_2 = arith.constant 0 : index
    %c0_3 = arith.constant 0 : index
    %4 = vector.load %arg4[%c0_2, %c0_3] : memref<16x128xf32, #tpu.memory_space<vmem>>, vector<16x128xf32>
    %cst = arith.constant dense<0.000000e+00> : vector<8x128xf32>
    %5 = tpu.matmul %3, %4, %cst {dimension_numbers = #tpu.dot_dimension_numbers<[1], [0], [0], [1], [0, 0, 1, 1], [], []>} : vector<8x16xf32>, vector<16x128xf32>, vector<8x128xf32> -> vector<8x128xf32>
    %c0_4 = arith.constant 0 : index
    %c0_5 = arith.constant 0 : index
    %6 = vector.load %arg5[%c0_4, %c0_5] : memref<8x128xf32, #tpu.memory_space<vmem>>, vector<8x128xf32>
    tpu.vector_store %arg5[%c0_4, %c0_5], %5 {strides = array<i32>} : memref<8x128xf32, #tpu.memory_space<vmem>>, vector<8x128xf32>,
    return
  }
  func.func @transform_0(%arg0: i32, %arg1: i32) -> (i32, i32) {
    %c0_i32 = arith.constant 0 : i32
    %c0_i32_0 = arith.constant 0 : i32
    return %arg0, %c0_i32 : i32, i32
  }
  func.func @transform_1(%arg0: i32, %arg1: i32) -> (i32, i32) {
    %c0_i32 = arith.constant 0 : i32
    %c0_i32_0 = arith.constant 0 : i32
    %c0_i32_1 = arith.constant 0 : i32
    return %c0_i32, %c0_i32_0 : i32, i32
  }
  func.func @transform_2(%arg0: i32, %arg1: i32) -> (i32, i32) {
    %c0_i32 = arith.constant 0 : i32
    %c0_i32_0 = arith.constant 0 : i32
    return %c0_i32, %arg1 : i32, i32
  }
  func.func @transform_3(%arg0: i32, %arg1: i32) -> (i32, i32) {
    %c0_i32 = arith.constant 0 : i32
    return %arg0, %arg1 : i32, i32
  }
}

</mosaic_0001>

<bundles_post_ra>
// kernel: tpu_custom_call.1
= control target key start
LH: loop header
LB: loop body
LE: loop exit
PB: predicated region body
PF: predicated region fallthrough
CT: control target
= control target key end

     0   :  { %8 = vsyncpa [#allocation4], 0  ;;  %s1031_s0 = inlined_call_operand.hbm [shape: f32[16,32], index: 0, kind: input, shape index: {}]   ;;  %s1032_s1 = inlined_call_operand.hbm [shape: f32[16,32], index: 1, kind: input, shape index: {}]   ;;  %s1033_s2 = inlined_call_operand.hbm [shape: f32[16,128], index: 2, kind: input, shape index: {}]   ;;  %s1034_s3 = inlined_call_operand.hbm [shape: f32[16,128], index: 3, kind: output, shape index: {}]  }
   0x1   :  { %10 = vsyncpa [#allocation4 + $0x1], 0 }
   0x2   :  { %11 = vsyncpa [#allocation7], 0 }
   0x3   :  { %12 = vsyncpa [#allocation5], 0 }
   0x4   :  { %14 = vsyncpa [#allocation5 + $0x1], 0  ;;  %s841_s12 = smov 0   ;;  %s843_s13 = smov 0  }
   0x5   :  { %s845_s14 = smov 0   ;;  %s847_s15 = smov 0  }
   0x6   :  { %s849_s16 = smov 0   ;;  %s851_s17 = smov 0  }
   0x7 LB: > { %s519_s18 = sadd.s32 4294967295, %s811_s17   ;;  %s520_s19 = sadd.s32 4294967294, %s811_s17   ;;  %s811_s17 = sphi %s851_s17, %s20_s17   ;;  %s807_s16 = sphi %s849_s16, %s1054_s16   ;;  %s803_s15 = sphi %s847_s15, %s1053_s15   ;;  %s799_s14 = sphi %s845_s14, %s1052_s14   ;;  %s795_s13 = sphi %s843_s13, %s1051_s13   ;;  %s791_s12 = sphi %s841_s12, %s1050_s12  }
   0x8   : > { %p52_p0 = scmp.ne.s32.totalorder %s795_s13, %s791_s12  ;;  %p875_p1 = scmp.eq.s32.totalorder %s519_s18, 0 }
   0x9   : > { %p879_p2 = scmp.eq.s32.totalorder %s519_s18, 1  ;;  %p131_p3 = scmp.eq.s32.totalorder %s520_s19, 1 }
   0xa   : > { %s1038_s20 = scalar_select %p875_p1, 1, 0 }
   0xb   : > { %p885_p4 = por %p875_p1, %p52_p0  ;;  %p521_p5 = scmp.ge.s32.totalorder %s811_s17, 1 }
   0xc   : > { %p890_p6 = por %p131_p3, %p52_p0  ;;  %p138_p7 = scmp.lt.s32.totalorder %s811_s17, 3 }
   0xd   : > { %s1040_s22 = scalar_select %p885_p4, 1, 0 }
   0xe   : > { %s1041_s23 = scalar_select %p890_p6, 1, 0 }
   0xf   : > { %p895_p8 = pnand %p521_p5, %p138_p7  ;;  %s813_s25 = smov [#allocation6]  }
  0x10   : > { %s150_s26 = sshll.u32 %s813_s25, 4  ;;  %s814_s28 = smov [#allocation8]   ;;  %s151_s26 = int_to_ptr.vmem [resolvable:$true] %s150_s26 }
  0x11   : > { %p572_p9 = pneg %p895_p8  ;;  %s165_s29 = sshll.u32 %s814_s28, 4  ;;  %s166_s29 = int_to_ptr.vmem [resolvable:$true] %s165_s29 }
  0x12   : > { %s658_s30 = scalar_lea.vmem %s151_s26, 256  ;;  %p666_p5 = scmp.lt.s32.totalorder %s151_s26, %s151_s26 }
  0x13   : > { %p904_p11 = pnand %p572_p9, %p875_p1  ;;  %p659_p13 = scmp.ne.s32.totalorder %s151_s26, %s658_s30 }
  0x14   : > { %p667_p7 = scmp.lt.s32.totalorder %s658_s30, %s658_s30 }
  0x15   : > { %p649_p12 = pneg %p904_p11 }
  0x16   : > { %p668_p10 = por %p667_p7, %p666_p5 }
  0x17   : > { %p661_p0 = pnand %p659_p13, %p649_p12 }
  0x19   : > { %p662_p3 = pneg %p661_p0 }
  0x1b   : > { %p669_p9 = pnand %p668_p10, %p662_p3 }
  0x1d   : > { %672 = shalt.err (!%p669_p9)
}
  0x1e   : > { %s815_s4 = smov 128   ;;  %s816_s5 = smov 8  }
  0x1f   : > { %575 = dma.hbm_to_vmem [thread:$0]  (!%p904_p11), %s1032_s1, 256, %s151_s26, [#allocation7], %s815_s4, %s815_s4, %s816_s5  }
  0x20   : > { %s684_s8 = scalar_lea.vmem %s166_s29, 256  ;;  %p692_p1 = scmp.lt.s32.totalorder %s166_s29, %s166_s29 }
  0x21   : > { %p685_p6 = scmp.ne.s32.totalorder %s166_s29, %s684_s8  ;;  %p693_p4 = scmp.lt.s32.totalorder %s684_s8, %s684_s8 }
  0x23   : > { %p687_p13 = pnand %p685_p6, %p649_p12  ;;  %p694_p5 = por %p693_p4, %p692_p1 }
  0x25   : > { %p688_p0 = pneg %p687_p13 }
  0x27   : > { %p695_p10 = pnand %p694_p5, %p688_p0 }
  0x29   : > { %698 = shalt.err (!%p695_p10)
}
  0x2a   : > { %578 = dma.hbm_to_vmem [thread:$0]  (!%p904_p11), %s1033_s2, 256, %s166_s29, [#allocation7], %s815_s4, %s815_s4, %s816_s5  }
  0x2b   : > { %s32_s11 = sadd.s32 1, %s807_s16  ;;  %s39_s18 = sadd.s32 1, %s799_s14 }
  0x2c   : > { %p34_p1 = scmp.ge.s32.totalorder %s32_s11, 2  ;;  %p46_p4 = scmp.ne.s32.totalorder %s799_s14, %s795_s13 }
  0x2d   : > { %p47_p6 = scmp.eq.s32.totalorder %s811_s17, 0  ;;  %p589_p12 = scmp.lt.s32.totalorder %s811_s17, 2 }
  0x2e   : > { %s1056_s11 = smov (%p34_p1, %s32_s11), 0  ;;  %p936_p7 = por %p879_p2, %p46_p4 }
  0x2f   : > { %p48_p3 = por %p47_p6, %p46_p4  ;;  %s36_s25 = ssub.s32 %s807_s16, %s1056_s11 }
  0x30   : > { %s179_s26 = sand.u32 1, %s799_s14   ;;  %p37_p9 = scmp.eq.s32.totalorder %s36_s25, 0 }
  0x31   : > { %s525_s27 = sshll.u32 %s179_s26, 3  ;;  %s526_s28 = sshll.u32 %s807_s16, 7 }
  0x32   : > { %s945_s29 = scalar_select %p37_p9, %s799_s14, %s39_s18  }
  0x33   : > { %s188_s5 = scalar_lea.hbm %s1031_s0, %s526_s28  ;;  %s183_s6 = scalar_lea.vmem [#allocation3], %s525_s27 }
  0x34   : > { %s190_s7 = sshll.u32 %s183_s6, 4  ;;  %p952_p11 = pnand %p589_p12, %p48_p3  ;;  %s191_s7 = int_to_ptr.vmem [resolvable:$true] %s190_s7 }
  0x35   : > { %s180_s8 = scalar_lea.sflag [#allocation4], %s179_s26  ;;  %s712_s9 = scalar_lea.vmem %s191_s7, 128 }
  0x36   : > { %p701_p2 = pneg %p952_p11  ;;  %p713_p13 = scmp.ne.s32.totalorder %s191_s7, %s712_s9 }
  0x37   : > { %s817_s10 = smov [#allocation3]  }
  0x38   : > { %p715_p0 = pnand %p713_p13, %p701_p2  ;;  %s717_s18 = sshll.u32 %s817_s10, 4  ;;  %s718_s18 = int_to_ptr.vmem [resolvable:$false] %s717_s18 }
  0x39   : > { %s719_s25 = scalar_lea.vmem %s718_s18, 256  ;;  %p720_p10 = scmp.lt.s32.totalorder %s191_s7, %s718_s18 }
  0x3a   : > { %p716_p5 = pneg %p715_p0  ;;  %p721_p1 = scmp.lt.s32.totalorder %s719_s25, %s712_s9 }
  0x3c   : > { %p722_p4 = por %p721_p1, %p720_p10 }
  0x3e   : > { %p723_p6 = pnand %p722_p4, %p716_p5 }
  0x40   : > { %726 = shalt.err (!%p723_p6)
}
  0x41   : > { %582 = dma.hbm_to_vmem [thread:$0]  (!%p952_p11), %s188_s5, 128, %s191_s7, %s180_s8  }
  0x42   : > { %199 = sbr.rel (%p895_p8) target bundleno = 495 (0x1ef), region = 32  ;;  %s963_s26 = sand.u32 (!%p895_p8), 1, %s795_s13  }
  0x43   : > { %s528_s27 = sshll.u32 (!%p895_p8), %s963_s26, 3  ;;  %s202_s28 = scalar_lea.sflag (!%p895_p8), [#allocation4], %s963_s26 }
  0x44   : > { %s205_s30 = scalar_lea.vmem (!%p895_p8), [#allocation3], %s528_s27  ;;  %p1046_p12 = scmp.ne.s32.totalorder (!%p895_p8), %s1040_s22, 0 }
  0x47   : > { %778 = dma.done.wait (%p1046_p12), %s202_s28, 128  }
  0x48   : > { %780 = vsyncadd (%p1046_p12), %s202_s28, 4294967168  ;;  %p1047_p3 = scmp.ne.s32.totalorder %s1038_s20, 0 }
  0x4a   : > { %782 = dma.done.wait (%p1047_p3), [#allocation7], 512  }
  0x4b   : > { %784 = vsyncadd (%p1047_p3), [#allocation7], 4294966784  ;;  %v818_v0 = vmov 0.0   ;;  %vm819_vm0 = vmmov 0   ;;  %vm243_vm1 = vcmask 261120   ;;  %v242_v1 = vld [vmem:[#allocation6 + $0x8] sm:$0xff] }
  0x4c   : > { %546 = vmatprep.subr.mxu0 %v818_v0  ;;  %550 = vmatprep.mubr.msk.f32.mxu0 %vm819_vm0, %v818_v0  ;;  %v241_v2 = vld [vmem:[#allocation6] sm:$0xff]  ;;  %v240_v3 = vld [vmem:[%s205_s30] sm:$0xff]  ;;  %vm324_vm2 = vcmask 130048   ;;  %s235_s20 = scalar_lea.vmem [#allocation9], %s528_s27  ;;  %s537_s24 = sshll.u32 %s803_s15, 7 }
  0x4d   : > { %553 = vmatprep.subr.mxu1 %v818_v0  ;;  %557 = vmatprep.mubr.msk.f32.mxu1 %vm819_vm0, %v818_v0  ;;  %v328_v4 = vld [vmem:[#allocation8 + $0x8] sm:$0xff]  ;;  %v327_v5 = vld [vmem:[#allocation8] sm:$0xff]  ;;  %s419_s22 = sshll.u32 %s235_s20, 4  ;;  %s985_s6 = scalar_lea.hbm %s1034_s3, %s537_s24  ;;  %s980_s22 = int_to_ptr.vmem [resolvable:$true] %s419_s22 }
  0x4e   : > { %547 = vmatpush3.xpose.msk.msra.mxu0 %vm243_vm1, %v242_v1  ;;  %554 = vmatpush3.msra.mxu1 %v328_v4  ;;  %s405_s7 = scalar_lea.sflag [#allocation5], %s963_s26  ;;  %s727_s21 = scalar_lea.vmem %s980_s22, 128 }
  0x4f   : > { %548 = vmatprep.subr.mxu0 %v818_v0  ;;  %555 = vmatprep.subr.mxu1 %v818_v0  ;;  %p728_p8 = scmp.ne.s32.totalorder %s980_s22, %s727_s21  ;;  %s820_s15 = smov [#allocation9]  }
  0x50   : > { %556 = vmatpush3.msra.mxu1 %v327_v5  ;;  %s731_s8 = sshll.u32 %s820_s15, 4  ;;  %s732_s8 = int_to_ptr.vmem [resolvable:$false] %s731_s8 }
  0x51   : > { %p729_p9 = pnand %p728_p8, %p936_p7  ;;  %s733_s9 = scalar_lea.vmem %s732_s8, 256 }
  0x52   : > { %549 = vmatpush3.xpose.msk.msra.mxu0 %vm243_vm1, %v241_v2  ;;  %p734_p2 = scmp.lt.s32.totalorder %s980_s22, %s732_s8  ;;  %p735_p13 = scmp.lt.s32.totalorder %s733_s9, %s727_s21 }
  0x53   : > { %p730_p11 = pneg %p729_p9 }
  0x54   : > { %p736_p0 = por %p735_p13, %p734_p2 }
  0x55   : > { %551 = vmatmul.mubr.msk.f32.vlgmr.msra.gmra.mxu0 %vm243_vm1, %v240_v3 }
  0x56   : > { %p737_p5 = pnand %p736_p0, %p730_p11 }
 0x115   : > { %v319_v6 = vpop.f32.mrf.mxu0 }
 0x116   : > { %v323_v7 = vmul.f32 1.5, %v319_v6 }
 0x117   : > { %v552_v8 = vpop.f32.mrf.mxu0 }
 0x118   : > { %325 = vst.msk [vmem:[#allocation2] sm:$0xff] %vm324_vm2, %v323_v7 }
 0x11f   : > { %v326_v9 = vld [vmem:[#allocation2] sm:$0xff] }
 0x120   : > { %558 = vmatmul.mubr.msk.f32.vlgmr.msra.gmra.mxu1 %vm324_vm2, %v326_v9 }
 0x1e0   : > { %v399_v10 = vpop.f32.mrf.mxu1 }
 0x1e1   : > { %403 = vst [vmem:[%s235_s20] sm:$0xff] %v399_v10 }
 0x1e2   : > { %v559_v11 = vpop.f32.mrf.mxu1 }
 0x1e3   : > { %740 = shalt.err (!%p737_p5)
}
 0x1e4   : > { %s741_s10 = scalar_lea.hbm %s985_s6, 128  ;;  %s745_s26 = scalar_lea.hbm %s1034_s3, 256 }
 0x1e5   : > { %p742_p10 = scmp.ne.s32.totalorder %s985_s6, %s741_s10  ;;  %p746_p6 = scmp.lt.s32.totalorder %s985_s6, %s1034_s3 }
 0x1e6   : > { %p747_p12 = scmp.lt.s32.totalorder %s745_s26, %s741_s10 }
 0x1e7   : > { %p743_p1 = pnand %p742_p10, %p936_p7 }
 0x1e8   : > { %p748_p3 = por %p747_p12, %p746_p6 }
 0x1e9   : > { %p744_p4 = pneg %p743_p1 }
 0x1eb   : > { %p749_p8 = pnand %p748_p3, %p744_p4 }
 0x1ed   : > { %752 = shalt.err (!%p749_p8)
}
 0x1ee   : > { %570 = dma.vmem_to_hbm [thread:$0]  (%p936_p7), %s980_s22, 128, %s985_s6, %s405_s7  }
 0x1ef PF: > { %s431_s30 = sand.u32 1, %s791_s12   ;;  %p1048_p9 = scmp.ne.s32.totalorder %s1041_s23, 0 }
 0x1f0   : > { %p1049_p11 = scmp.ge.s32.totalorder %s811_s17, 2  ;;  %s432_s20 = scalar_lea.sflag [#allocation5], %s431_s30 }
 0x1f2   : > { %p584_p2 = pnand %p1049_p11, %p1048_p9 }
 0x1f4   : > { %p585_p13 = pneg %p584_p2 }
 0x1f6   : > { %786 = dma.done.wait (%p585_p13), %s432_s20, 128  }
 0x1f7   : > { %788 = vsyncadd (%p585_p13), %s432_s20, 4294967168  ;;  %s20_s17 = sadd.s32 1, %s811_s17   ;;  %s1050_s12 = smov %s795_s13 }
 0x1f8   : > { %p17_p0 = scmp.ge.s32.totalorder %s20_s17, 4   ;;  %s1051_s13 = smov %s799_s14 }
 0x1f9   : > { %s1052_s14 = smov %s945_s29  ;;  %s1053_s15 = smov %s807_s16 }
 0x1fa   : > { %s1054_s16 = smov %s1056_s11  ;;  %19 = sbr.rel (!%p17_p0) target bundleno = 7 (0x7), region = 90 }
 0x1ff   :  { %437 = vsyncpa [#allocation4], 1 }
 0x200   :  { %439 = vsyncpa [#allocation4 + $0x1], 1 }
 0x201   :  { %440 = vsyncpa [#allocation7], 1 }
 0x202   :  { %441 = vsyncpa [#allocation5], 1 }
 0x203   :  { %443 = vsyncpa [#allocation5 + $0x1], 1 }

</bundles_post_ra>
